<compile_context>
chip_gen: v5e
topology: v5e:2x2
jax: 0.10.0
libtpu: 0.0.40
codegen_flags: <defaults>
</compile_context>

<pallas_src>
import functools

import jax
import jax.numpy as jnp
import numpy as np
from jax import lax
from jax.experimental import pallas as pl
from jax.experimental.pallas import tpu as pltpu

LN_EPS = 1e-5  # PyTorch nn.LayerNorm default


def _round_up(x, m):
    return (x + m - 1) // m * m


def _ln_relu(h, gamma, beta):
    """LayerNorm (f32 statistics) followed by ReLU."""
    mu = jnp.mean(h, axis=-1, keepdims=True)
    c = h - mu                                   # one live temp, not two
    var = jnp.mean(c * c, axis=-1, keepdims=True)
    return jnp.maximum(c * lax.rsqrt(var + LN_EPS) * gamma + beta, 0.0)


def mlp_kernel(x_ref,
               w1_ref, b1_ref, g1_ref, be1_ref,
               w2_ref, b2_ref, g2_ref, be2_ref,
               w3_ref, b3_ref,
               o_ref):
    # In-kernel bf16 cast of the x tile (VPU work hidden under the matmul;
    # saves a full serial HBM cast pass in the wrapper).
    x = x_ref[...].astype(w1_ref.dtype)

    # Linear 1: bf16 MXU operands, f32 accumulation; then LayerNorm+ReLU (f32)
    h = jnp.dot(x, w1_ref[...], preferred_element_type=jnp.float32)
    h = _ln_relu(h + b1_ref[...], g1_ref[...], be1_ref[...])

    # Linear 2: re-cast hidden to bf16 for the MXU, accumulate in f32
    h = jnp.dot(h.astype(w2_ref.dtype), w2_ref[...],
                preferred_element_type=jnp.float32)
    h = _ln_relu(h + b2_ref[...], g2_ref[...], be2_ref[...])

    # Output head Linear(D, 1): VPU multiply + lane (XLU) reduction.
    out = jnp.sum(h * w3_ref[...], axis=-1, keepdims=True) + b3_ref[...]
    o_ref[...] = out.astype(o_ref.dtype)


@functools.partial(jax.jit, static_argnames=("block_b",))
def mlp_layer_forward(x, params, block_b=1024):
    w1, b1, g1, be1, w2, b2, g2, be2, w3, b3 = params
    B, D = x.shape
    out_dtype = x.dtype
    f32, bf16 = jnp.float32, jnp.bfloat16
    x_bytes = x.dtype.itemsize

    # ---- VMEM budget: ~85% of physical capacity (v7x: 64 MiB/TC, v5e/v6e:
    # 128 MiB), leaving headroom for Mosaic internal scratch. ----
    try:
        cap = int(getattr(pltpu.get_tpu_info(), "vmem_capacity_bytes",
                          64 * 2 ** 20))
    except Exception:
        cap = 64 * 2 ** 20
    budget = int(0.85 * cap)

    def footprint(bb_):
        return int(
            2 * D * D * 2                 # w1 + w2 bf16, single-buffered
            + 2 * bb_ * D * x_bytes       # double-buffered x tile (native dtype)
            + 2 * bb_ * 4                 # double-buffered (bb, 1) output tile
            + 16 * D * 4                  # biases / LN params / head row
            + 3 * bb_ * D * 4             # f32 intermediates headroom
            + bb_ * D * 2)                # bf16 re-cast of the hidden act

    # ---- Batch tile: as large as block_b / the VMEM budget allow (amortizes
    # the ~0.35 us per-grid-step overhead), multiple of 16, and the grid step
    # count forced even (>=2 when B is large) for v7x's two TensorCores. ----
    bb_cap = max(16, min(int(block_b), _round_up(B, 16)))
    while bb_cap > 16 and footprint(bb_cap) > budget:
        bb_cap = max(16, _round_up(bb_cap // 2, 16))

    steps = pl.cdiv(B, bb_cap)
    if B >= 256:
        steps = max(steps, 2)             # use both v7x TensorCores
    if steps > 1 and steps % 2:
        steps += 1                        # even split across the two cores
    bb = max(16, min(bb_cap, _round_up(pl.cdiv(B, steps), 16)))
    grid = (pl.cdiv(B, bb),)

    vmem_limit = int(min(budget, max(32 * 2 ** 20, footprint(bb))))

    # Weight cast is a no-op when weights are already stored in bf16 (the
    # recommended storage format); small params are tiny, reshape is free.
    w1_bf = w1.astype(bf16)
    w2_bf = w2.astype(bf16)
    b1r, g1r, be1r, b2r, g2r, be2r = (t.astype(f32).reshape(1, D)
                                      for t in (b1, g1, be1, b2, g2, be2))
    w3_row = w3.astype(f32).reshape(1, D)       # head weight as a lane row
    b3r = b3.astype(f32).reshape(1, 1)

    def rep(shape):
        # Weight-like operand: same block every grid step -> single-buffer it
        # (double-buffering a constant block only burns VMEM, which matters
        # most on v7x's 64 MiB).
        return pl.BlockSpec(shape, lambda i: (0,) * len(shape),
                            pipeline_mode=pl.Buffered(1))

    out = pl.pallas_call(
        mlp_kernel,
        out_shape=jax.ShapeDtypeStruct((B, 1), out_dtype),
        grid_spec=pltpu.PrefetchScalarGridSpec(
            num_scalar_prefetch=0,
            grid=grid,
            in_specs=[
                pl.BlockSpec((bb, D), lambda i: (i, 0)),              # x tile
                rep((D, D)), rep((1, D)), rep((1, D)), rep((1, D)),   # layer 1
                rep((D, D)), rep((1, D)), rep((1, D)), rep((1, D)),   # layer 2
                rep((1, D)), rep((1, 1)),                             # head
            ],
            # Ragged last tile: edge-block writes are masked by the pipeline,
            # so no host-side padding / slicing is needed.
            out_specs=pl.BlockSpec((bb, 1), lambda i: (i, 0)),
        ),
        compiler_params=pltpu.CompilerParams(
            dimension_semantics=("parallel",),
            vmem_limit_bytes=vmem_limit),
    )(x, w1_bf, b1r, g1r, be1r, w2_bf, b2r, g2r, be2r, w3_row, b3r)
    return out


def init_params(key, input_dim, dtype=jnp.float32):
    """Deterministic synthetic init (xavier-normal weights like the module).

    The two DxD matmul weights are stored in bf16 (native MXU dtype, halves
    weight DMA / VMEM); biases, LayerNorm params and the head stay in f32.
    """
    k1, k2, k3, kb1, kb2, kb3 = jax.random.split(key, 6)

    def xavier_normal(k, fan_in, fan_out, d):
        std = float(np.sqrt(2.0 / (fan_in + fan_out)))
        return (jax.random.normal(k, (fan_in, fan_out), dtype=jnp.float32)
                * std).astype(d)

    D = input_dim
    w1 = xavier_normal(k1, D, D, jnp.bfloat16)
    w2 = xavier_normal(k2, D, D, jnp.bfloat16)
    w3 = xavier_normal(k3, D, 1, dtype)
    bound = 1.0 / np.sqrt(D)
    b1 = jax.random.uniform(kb1, (1, D), minval=-bound, maxval=bound).astype(dtype)
    b2 = jax.random.uniform(kb2, (1, D), minval=-bound, maxval=bound).astype(dtype)
    b3 = jax.random.uniform(kb3, (1, 1), minval=-bound, maxval=bound).astype(dtype)
    # LayerNorm affine params (PyTorch default: gamma=1, beta=0)
    g1 = jnp.ones((1, D), dtype=dtype)
    be1 = jnp.zeros((1, D), dtype=dtype)
    g2 = jnp.ones((1, D), dtype=dtype)
    be2 = jnp.zeros((1, D), dtype=dtype)
    return (w1, b1, g1, be1, w2, b2, g2, be2, w3, b3)


def reference_forward(x, params):
    """Pure-JAX reference with the same numerics as the kernel
    (bf16 matmul operands, f32 accumulation / LayerNorm)."""
    w1, b1, g1, be1, w2, b2, g2, be2, w3, b3 = params
    f32, bf16 = jnp.float32, jnp.bfloat16

    def ln_relu(h, g, b):
        mu = jnp.mean(h, axis=-1, keepdims=True)
        var = jnp.mean((h - mu) ** 2, axis=-1, keepdims=True)
        return jnp.maximum((h - mu) * lax.rsqrt(var + LN_EPS) * g + b, 0.0)

    h = jnp.dot(x.astype(bf16), w1.astype(bf16),
                preferred_element_type=f32) + b1.astype(f32)
    h = ln_relu(h, g1.astype(f32), be1.astype(f32))
    h = jnp.dot(h.astype(bf16), w2.astype(bf16),
                preferred_element_type=f32) + b2.astype(f32)
    h = ln_relu(h, g2.astype(f32), be2.astype(f32))
    out = jnp.sum(h * w3.astype(f32).reshape(1, -1), axis=-1, keepdims=True)
    return out + b3.astype(f32).reshape(1, 1)


if __name__ == "__main__":
    key = jax.random.PRNGKey(0)
    kx, kp, kx2 = jax.random.split(key, 3)

    # Small test shapes (real adapter sizes use D >= 512 and a large batch,
    # where the 1024-row batch tile and bf16 MXU path pay off).
    B, D = 16, 32
    x = jax.random.normal(kx, (B, D), dtype=jnp.float32)
    params = init_params(kp, D)

    out = jax.block_until_ready(mlp_layer_forward(x, params))
    ref = reference_forward(x, params)
    assert out.shape == (B, 1)
    np.testing.assert_allclose(np.asarray(out), np.asarray(ref),
                               rtol=2e-2, atol=2e-2)

    # Ragged batch (B not a multiple of the tile): exercises the masked
    # edge-block read/write path that replaced host-side padding.
    B2 = 50
    x2 = jax.random.normal(kx2, (B2, D), dtype=jnp.float32)
    out2 = jax.block_until_ready(mlp_layer_forward(x2, params))
    ref2 = reference_forward(x2, params)
    assert out2.shape == (B2, 1)
    np.testing.assert_allclose(np.asarray(out2), np.asarray(ref2),
                               rtol=2e-2, atol=2e-2)

    print("KERNEL_OK")
</pallas_src>

<mosaic_0001>
module attributes {stable_mosaic.version = 11 : i64} {
  func.func @mlp_kernel(%arg0: i32, %arg1: memref<16x32xf32, #tpu.memory_space<vmem>>, %arg2: memref<32x32xbf16, #tpu.memory_space<vmem>>, %arg3: memref<1x32xf32, #tpu.memory_space<vmem>>, %arg4: memref<1x32xf32, #tpu.memory_space<vmem>>, %arg5: memref<1x32xf32, #tpu.memory_space<vmem>>, %arg6: memref<32x32xbf16, #tpu.memory_space<vmem>>, %arg7: memref<1x32xf32, #tpu.memory_space<vmem>>, %arg8: memref<1x32xf32, #tpu.memory_space<vmem>>, %arg9: memref<1x32xf32, #tpu.memory_space<vmem>>, %arg10: memref<1x32xf32, #tpu.memory_space<vmem>>, %arg11: memref<1x1xf32, #tpu.memory_space<vmem>>, %arg12: memref<16x1xf32, #tpu.memory_space<vmem>>) attributes {dimension_semantics = [#tpu.dimension_semantics<parallel>], iteration_bounds = array<i64: 1>, scalar_prefetch = 0 : i64, scratch_operands = 0 : i64, tpu.core_type = #tpu.core_type<tc>, window_params = [{transform_indices = @transform_0, window_bounds = array<i64: 16, 32>}, {pipeline_mode = #tpu.pipeline_mode<synchronous>, transform_indices = @transform_1, window_bounds = array<i64: 32, 32>}, {pipeline_mode = #tpu.pipeline_mode<synchronous>, transform_indices = @transform_2, window_bounds = array<i64: 1, 32>}, {pipeline_mode = #tpu.pipeline_mode<synchronous>, transform_indices = @transform_3, window_bounds = array<i64: 1, 32>}, {pipeline_mode = #tpu.pipeline_mode<synchronous>, transform_indices = @transform_4, window_bounds = array<i64: 1, 32>}, {pipeline_mode = #tpu.pipeline_mode<synchronous>, transform_indices = @transform_5, window_bounds = array<i64: 32, 32>}, {pipeline_mode = #tpu.pipeline_mode<synchronous>, transform_indices = @transform_6, window_bounds = array<i64: 1, 32>}, {pipeline_mode = #tpu.pipeline_mode<synchronous>, transform_indices = @transform_7, window_bounds = array<i64: 1, 32>}, {pipeline_mode = #tpu.pipeline_mode<synchronous>, transform_indices = @transform_8, window_bounds = array<i64: 1, 32>}, {pipeline_mode = #tpu.pipeline_mode<synchronous>, transform_indices = @transform_9, window_bounds = array<i64: 1, 32>}, {pipeline_mode = #tpu.pipeline_mode<synchronous>, transform_indices = @transform_10, window_bounds = array<i64: 1, 1>}, {transform_indices = @transform_11, window_bounds = array<i64: 16, 1>}]} {
    %c0 = arith.constant 0 : index
    %c0_0 = arith.constant 0 : index
    %0 = vector.load %arg1[%c0, %c0_0] : memref<16x32xf32, #tpu.memory_space<vmem>>, vector<16x32xf32>
    %1 = arith.truncf %0 : vector<16x32xf32> to vector<16x32xbf16>
    %c0_1 = arith.constant 0 : index
    %c0_2 = arith.constant 0 : index
    %2 = vector.load %arg2[%c0_1, %c0_2] : memref<32x32xbf16, #tpu.memory_space<vmem>>, vector<32x32xbf16>
    %cst = arith.constant dense<0.000000e+00> : vector<16x32xf32>
    %3 = tpu.matmul %1, %2, %cst {dimension_numbers = #tpu.dot_dimension_numbers<[1], [0], [0], [1], [0, 0, 1, 1], [], []>} : vector<16x32xbf16>, vector<32x32xbf16>, vector<16x32xf32> -> vector<16x32xf32>
    %c0_3 = arith.constant 0 : index
    %c0_4 = arith.constant 0 : index
    %4 = vector.load %arg3[%c0_3, %c0_4] : memref<1x32xf32, #tpu.memory_space<vmem>>, vector<1x32xf32>
    %5 = vector.broadcast %4 : vector<1x32xf32> to vector<16x32xf32>
    %6 = arith.addf %3, %5 : vector<16x32xf32>
    %c0_5 = arith.constant 0 : index
    %c0_6 = arith.constant 0 : index
    %7 = vector.load %arg4[%c0_5, %c0_6] : memref<1x32xf32, #tpu.memory_space<vmem>>, vector<1x32xf32>
    %c0_7 = arith.constant 0 : index
    %c0_8 = arith.constant 0 : index
    %8 = vector.load %arg5[%c0_7, %c0_8] : memref<1x32xf32, #tpu.memory_space<vmem>>, vector<1x32xf32>
    %cst_9 = arith.constant dense<0.000000e+00> : vector<16xf32>
    %9 = vector.multi_reduction <add>, %6, %cst_9 [1] : vector<16x32xf32> to vector<16xf32>
    %10 = vector.shape_cast %9 : vector<16xf32> to vector<16x1xf32>
    %cst_10 = arith.constant 3.200000e+01 : f32
    %11 = vector.broadcast %cst_10 : f32 to vector<16x1xf32>
    %12 = arith.divf %10, %11 : vector<16x1xf32>
    %13 = vector.broadcast %12 : vector<16x1xf32> to vector<16x32xf32>
    %14 = arith.subf %6, %13 : vector<16x32xf32>
    %15 = arith.mulf %14, %14 : vector<16x32xf32>
    %cst_11 = arith.constant dense<0.000000e+00> : vector<16xf32>
    %16 = vector.multi_reduction <add>, %15, %cst_11 [1] : vector<16x32xf32> to vector<16xf32>
    %17 = vector.shape_cast %16 : vector<16xf32> to vector<16x1xf32>
    %cst_12 = arith.constant 3.200000e+01 : f32
    %18 = vector.broadcast %cst_12 : f32 to vector<16x1xf32>
    %19 = arith.divf %17, %18 : vector<16x1xf32>
    %cst_13 = arith.constant 9.99999974E-6 : f32
    %20 = vector.broadcast %cst_13 : f32 to vector<16x1xf32>
    %21 = arith.addf %19, %20 : vector<16x1xf32>
    %22 = math.rsqrt %21 : vector<16x1xf32>
    %23 = vector.broadcast %22 : vector<16x1xf32> to vector<16x32xf32>
    %24 = arith.mulf %14, %23 : vector<16x32xf32>
    %25 = vector.broadcast %7 : vector<1x32xf32> to vector<16x32xf32>
    %26 = arith.mulf %24, %25 : vector<16x32xf32>
    %27 = vector.broadcast %8 : vector<1x32xf32> to vector<16x32xf32>
    %28 = arith.addf %26, %27 : vector<16x32xf32>
    %cst_14 = arith.constant 0.000000e+00 : f32
    %29 = vector.broadcast %cst_14 : f32 to vector<16x32xf32>
    %30 = arith.maximumf %28, %29 : vector<16x32xf32>
    %31 = arith.truncf %30 : vector<16x32xf32> to vector<16x32xbf16>
    %c0_15 = arith.constant 0 : index
    %c0_16 = arith.constant 0 : index
    %32 = vector.load %arg6[%c0_15, %c0_16] : memref<32x32xbf16, #tpu.memory_space<vmem>>, vector<32x32xbf16>
    %cst_17 = arith.constant dense<0.000000e+00> : vector<16x32xf32>
    %33 = tpu.matmul %31, %32, %cst_17 {dimension_numbers = #tpu.dot_dimension_numbers<[1], [0], [0], [1], [0, 0, 1, 1], [], []>} : vector<16x32xbf16>, vector<32x32xbf16>, vector<16x32xf32> -> vector<16x32xf32>
    %c0_18 = arith.constant 0 : index
    %c0_19 = arith.constant 0 : index
    %34 = vector.load %arg7[%c0_18, %c0_19] : memref<1x32xf32, #tpu.memory_space<vmem>>, vector<1x32xf32>
    %35 = vector.broadcast %34 : vector<1x32xf32> to vector<16x32xf32>
    %36 = arith.addf %33, %35 : vector<16x32xf32>
    %c0_20 = arith.constant 0 : index
    %c0_21 = arith.constant 0 : index
    %37 = vector.load %arg8[%c0_20, %c0_21] : memref<1x32xf32, #tpu.memory_space<vmem>>, vector<1x32xf32>
    %c0_22 = arith.constant 0 : index
    %c0_23 = arith.constant 0 : index
    %38 = vector.load %arg9[%c0_22, %c0_23] : memref<1x32xf32, #tpu.memory_space<vmem>>, vector<1x32xf32>
    %cst_24 = arith.constant dense<0.000000e+00> : vector<16xf32>
    %39 = vector.multi_reduction <add>, %36, %cst_24 [1] : vector<16x32xf32> to vector<16xf32>
    %40 = vector.shape_cast %39 : vector<16xf32> to vector<16x1xf32>
    %cst_25 = arith.constant 3.200000e+01 : f32
    %41 = vector.broadcast %cst_25 : f32 to vector<16x1xf32>
    %42 = arith.divf %40, %41 : vector<16x1xf32>
    %43 = vector.broadcast %42 : vector<16x1xf32> to vector<16x32xf32>
    %44 = arith.subf %36, %43 : vector<16x32xf32>
    %45 = arith.mulf %44, %44 : vector<16x32xf32>
    %cst_26 = arith.constant dense<0.000000e+00> : vector<16xf32>
    %46 = vector.multi_reduction <add>, %45, %cst_26 [1] : vector<16x32xf32> to vector<16xf32>
    %47 = vector.shape_cast %46 : vector<16xf32> to vector<16x1xf32>
    %cst_27 = arith.constant 3.200000e+01 : f32
    %48 = vector.broadcast %cst_27 : f32 to vector<16x1xf32>
    %49 = arith.divf %47, %48 : vector<16x1xf32>
    %cst_28 = arith.constant 9.99999974E-6 : f32
    %50 = vector.broadcast %cst_28 : f32 to vector<16x1xf32>
    %51 = arith.addf %49, %50 : vector<16x1xf32>
    %52 = math.rsqrt %51 : vector<16x1xf32>
    %53 = vector.broadcast %52 : vector<16x1xf32> to vector<16x32xf32>
    %54 = arith.mulf %44, %53 : vector<16x32xf32>
    %55 = vector.broadcast %37 : vector<1x32xf32> to vector<16x32xf32>
    %56 = arith.mulf %54, %55 : vector<16x32xf32>
    %57 = vector.broadcast %38 : vector<1x32xf32> to vector<16x32xf32>
    %58 = arith.addf %56, %57 : vector<16x32xf32>
    %cst_29 = arith.constant 0.000000e+00 : f32
    %59 = vector.broadcast %cst_29 : f32 to vector<16x32xf32>
    %60 = arith.maximumf %58, %59 : vector<16x32xf32>
    %c0_30 = arith.constant 0 : index
    %c0_31 = arith.constant 0 : index
    %61 = vector.load %arg10[%c0_30, %c0_31] : memref<1x32xf32, #tpu.memory_space<vmem>>, vector<1x32xf32>
    %62 = vector.broadcast %61 : vector<1x32xf32> to vector<16x32xf32>
    %63 = arith.mulf %60, %62 : vector<16x32xf32>
    %cst_32 = arith.constant dense<0.000000e+00> : vector<16xf32>
    %64 = vector.multi_reduction <add>, %63, %cst_32 [1] : vector<16x32xf32> to vector<16xf32>
    %65 = vector.shape_cast %64 : vector<16xf32> to vector<16x1xf32>
    %c0_33 = arith.constant 0 : index
    %c0_34 = arith.constant 0 : index
    %66 = vector.load %arg11[%c0_33, %c0_34] : memref<1x1xf32, #tpu.memory_space<vmem>>, vector<1x1xf32>
    %67 = vector.broadcast %66 : vector<1x1xf32> to vector<16x1xf32>
    %68 = arith.addf %65, %67 : vector<16x1xf32>
    %c0_35 = arith.constant 0 : index
    %c0_36 = arith.constant 0 : index
    %69 = vector.load %arg12[%c0_35, %c0_36] : memref<16x1xf32, #tpu.memory_space<vmem>>, vector<16x1xf32>
    tpu.vector_store %arg12[%c0_35, %c0_36], %68 {strides = array<i32>} : memref<16x1xf32, #tpu.memory_space<vmem>>, vector<16x1xf32>,
    return
  }
  func.func @transform_0(%arg0: i32) -> (i32, i32) {
    %c0_i32 = arith.constant 0 : i32
    %c0_i32_0 = arith.constant 0 : i32
    return %arg0, %c0_i32 : i32, i32
  }
  func.func @transform_1(%arg0: i32) -> (i32, i32) {
    %c0_i32 = arith.constant 0 : i32
    %c0_i32_0 = arith.constant 0 : i32
    %c0_i32_1 = arith.constant 0 : i32
    return %c0_i32, %c0_i32_0 : i32, i32
  }
  func.func @transform_2(%arg0: i32) -> (i32, i32) {
    %c0_i32 = arith.constant 0 : i32
    %c0_i32_0 = arith.constant 0 : i32
    %c0_i32_1 = arith.constant 0 : i32
    return %c0_i32, %c0_i32_0 : i32, i32
  }
  func.func @transform_3(%arg0: i32) -> (i32, i32) {
    %c0_i32 = arith.constant 0 : i32
    %c0_i32_0 = arith.constant 0 : i32
    %c0_i32_1 = arith.constant 0 : i32
    return %c0_i32, %c0_i32_0 : i32, i32
  }
  func.func @transform_4(%arg0: i32) -> (i32, i32) {
    %c0_i32 = arith.constant 0 : i32
    %c0_i32_0 = arith.constant 0 : i32
    %c0_i32_1 = arith.constant 0 : i32
    return %c0_i32, %c0_i32_0 : i32, i32
  }
  func.func @transform_5(%arg0: i32) -> (i32, i32) {
    %c0_i32 = arith.constant 0 : i32
    %c0_i32_0 = arith.constant 0 : i32
    %c0_i32_1 = arith.constant 0 : i32
    return %c0_i32, %c0_i32_0 : i32, i32
  }
  func.func @transform_6(%arg0: i32) -> (i32, i32) {
    %c0_i32 = arith.constant 0 : i32
    %c0_i32_0 = arith.constant 0 : i32
    %c0_i32_1 = arith.constant 0 : i32
    return %c0_i32, %c0_i32_0 : i32, i32
  }
  func.func @transform_7(%arg0: i32) -> (i32, i32) {
    %c0_i32 = arith.constant 0 : i32
    %c0_i32_0 = arith.constant 0 : i32
    %c0_i32_1 = arith.constant 0 : i32
    return %c0_i32, %c0_i32_0 : i32, i32
  }
  func.func @transform_8(%arg0: i32) -> (i32, i32) {
    %c0_i32 = arith.constant 0 : i32
    %c0_i32_0 = arith.constant 0 : i32
    %c0_i32_1 = arith.constant 0 : i32
    return %c0_i32, %c0_i32_0 : i32, i32
  }
  func.func @transform_9(%arg0: i32) -> (i32, i32) {
    %c0_i32 = arith.constant 0 : i32
    %c0_i32_0 = arith.constant 0 : i32
    %c0_i32_1 = arith.constant 0 : i32
    return %c0_i32, %c0_i32_0 : i32, i32
  }
  func.func @transform_10(%arg0: i32) -> (i32, i32) {
    %c0_i32 = arith.constant 0 : i32
    %c0_i32_0 = arith.constant 0 : i32
    %c0_i32_1 = arith.constant 0 : i32
    return %c0_i32, %c0_i32_0 : i32, i32
  }
  func.func @transform_11(%arg0: i32) -> (i32, i32) {
    %c0_i32 = arith.constant 0 : i32
    %c0_i32_0 = arith.constant 0 : i32
    return %arg0, %c0_i32 : i32, i32
  }
}

</mosaic_0001>

<bundles_post_ra>
// kernel: mlp_layer_forward.1
= control target key start
LH: loop header
LB: loop body
LE: loop exit
PB: predicated region body
PF: predicated region fallthrough
CT: control target
= control target key end

     0   :  { %s570_s0 = inlined_call_operand.hbm [shape: f32[16,32], index: 0, kind: input, shape index: {}]   ;;  %s571_s1 = inlined_call_operand.hbm [shape: bf16[32,32], index: 1, kind: input, shape index: {}]   ;;  %s572_s2 = inlined_call_operand.vmem [shape: f32[1,32], index: 2, kind: input, shape index: {}]   ;;  %s573_s3 = inlined_call_operand.vmem [shape: f32[1,32], index: 3, kind: input, shape index: {}]   ;;  %s574_s4 = inlined_call_operand.vmem [shape: f32[1,32], index: 4, kind: input, shape index: {}]   ;;  %s575_s5 = inlined_call_operand.hbm [shape: bf16[32,32], index: 5, kind: input, shape index: {}]   ;;  %s576_s6 = inlined_call_operand.vmem [shape: f32[1,32], index: 6, kind: input, shape index: {}]   ;;  %s577_s7 = inlined_call_operand.vmem [shape: f32[1,32], index: 7, kind: input, shape index: {}]   ;;  %s578_s8 = inlined_call_operand.vmem [shape: f32[1,32], index: 8, kind: input, shape index: {}]   ;;  %s579_s9 = inlined_call_operand.vmem [shape: f32[1,32], index: 9, kind: input, shape index: {}]   ;;  %s580_s10 = inlined_call_operand.<no memory space> [shape: f32[1,1], index: 10, kind: input, shape index: {}]   ;;  %s581_s11 = inlined_call_operand.vmem [shape: f32[16,1], index: 11, kind: output, shape index: {}]  }
   0x1   :  { %v16_v0 = vstv %s580_s10 }
   0x2   :  { %17 = vst [vmem:[#allocation2] sm:$0x1] %v16_v0 }
   0x3   :  { %18 = vsyncpa [#allocation4], 0 }
   0x4   :  { %19 = vsyncpa [#allocation6], 0  ;;  %s37_s21 = sshll.u32 %s571_s1, 4  ;;  %s441_s22 = smov [#allocation5]   ;;  %s38_s21 = int_to_ptr.hbm [resolvable:$true] %s37_s21 }
   0x5   :  { %s39_s23 = sshll.u32 %s441_s22, 4  ;;  %s24_s26 = sshll.u32 %s570_s0, 4  ;;  %s40_s23 = int_to_ptr.vmem [resolvable:$true] %s39_s23  ;;  %s25_s26 = int_to_ptr.hbm [resolvable:$true] %s24_s26 }
   0x6   :  { %s442_s27 = smov 64   ;;  %s443_s28 = smov 4  }
   0x7   :  { %45 = dma.hbm_to_vmem [thread:$0]  %s38_s21, 256, %s40_s23, [#allocation6], %s442_s27, %s442_s27, %s443_s28  }
   0x8   :  { %s444_s10 = smov [#allocation3]   ;;  %s445_s30 = smov 128  }
   0x9   :  { %s26_s29 = sshll.u32 %s444_s10, 4  ;;  %s446_s12 = smov 8   ;;  %s27_s29 = int_to_ptr.vmem [resolvable:$true] %s26_s29 }
   0xa   :  { %32 = dma.hbm_to_vmem [thread:$0]  %s25_s26, 256, %s27_s29, [#allocation4], %s445_s30, %s445_s30, %s446_s12  }
   0xb   :  { %s56_s14 = sshll.u32 %s575_s5, 4  ;;  %s447_s15 = smov [#allocation7]   ;;  %s57_s14 = int_to_ptr.hbm [resolvable:$true] %s56_s14 }
   0xc   :  { %s58_s16 = sshll.u32 %s447_s15, 4  ;;  %s59_s16 = int_to_ptr.vmem [resolvable:$true] %s58_s16 }
   0xd   :  { %64 = dma.hbm_to_vmem [thread:$0]  %s57_s14, 256, %s59_s16, [#allocation6], %s442_s27, %s442_s27, %s443_s28  }
   0xe   :  { %437 = dma.done.wait [#allocation4], 256  }
   0xf   :  { %438 = vsyncadd [#allocation4], 4294967040 }
  0x10   :  { %439 = dma.done.wait [#allocation6], 512  }
  0x11   :  { %440 = vsyncadd [#allocation6], 4294966784  ;;  %v336_v1 = vld [vmem:[#allocation5 + $0x8] sm:$0xff]  ;;  %v335_v2 = vld [vmem:[#allocation5] sm:$0xff]  ;;  %vm111_vm0 = vcmask 261120   ;;  %v448_v13 = vmov 32.0  }
  0x12   :  { %v88_v3 = vld [vmem:[#allocation3] sm:$0xff]  ;;  %v89_v4 = vld [vmem:[#allocation3 + $0x8] sm:$0xff]  ;;  %121 = vmatpush.bf16.msra.mxu0 %v336_v1  ;;  %v347_v6 = vld [vmem:[%s572_s2] ss:$0 sm:$0xff]  ;;  %355 = vrcp.f32 %v448_v13  ;;  %vm308_vm14 = vcmask 7168  }
  0x13   :  { %v90_v5 = vpack.c.bf16 %v89_v4, %v88_v3  ;;  %v338_v30 = vld [vmem:[#allocation7 + $0x8] sm:$0xff]  ;;  %v337_v33 = vld [vmem:[#allocation7] sm:$0xff]  ;;  %v348_v50 = vld [vmem:[%s573_s3] ss:$0 sm:$0xff] }
  0x14   :  { %224 = vmatpush.bf16.msra.mxu1 %v338_v30  ;;  %v349_v54 = vld [vmem:[%s574_s4] ss:$0 sm:$0xff] }
  0x15   :  { %v350_v63 = vld [vmem:[%s576_s6] ss:$0 sm:$0xff] }
  0x16   :  { %122 = vmatpush.bf16.msra.mxu0 %v335_v2 }
  0x18   :  { %v356_v14 = vpop.eup %355  ;;  %225 = vmatpush.bf16.msra.mxu1 %v337_v33 }
  0x19   :  { %325 = vmatmul.msk.bf16.vlgmr.msra.gmra.mxu0 %vm111_vm0, %v90_v5  ;;  %v138_v15 = vmul.f32 32.0, %v356_v14  ;;  %vm142_vm1 = vweird.f32 %v356_v14 }
  0x1b   :  { %v139_v16 = vsub.f32 1.0, %v138_v15 }
  0x1d   :  { %v140_v17 = vmul.f32 %v356_v14, %v139_v16 }
  0x1f   :  { %v141_v18 = vadd.f32 %v356_v14, %v140_v17 }
  0x21   :  { %v527_v19 = vsel %vm142_vm1, %v356_v14, %v141_v18 }
  0x96   :  { %v124_v7 = vpop.f32.mrf.mxu0 }
  0x97   :  { %v125_v8 = vadd.f32 %v347_v6, %v124_v7 }
  0x99   :  { %v131_v9 = vsel %vm111_vm0, %v125_v8, 0.0 }
  0x9a   :  { %132 = vadd.xlane.f32.xlu0 %v131_v9 }
  0x9e   :  { %v126_v10 = vpop.f32.mrf.mxu0 }
  0x9f   :  { %v127_v11 = vadd.f32 %v347_v6, %v126_v10 }
  0xa1   :  { %v134_v12 = vsel %vm111_vm0, %v127_v11, 0.0 }
  0xa2   :  { %135 = vadd.xlane.f32.xlu0 %v134_v12 }
 0x10d   :  { %v133_v20 = vpop.xlane.xlu0 %132 }
 0x10e   :  { %v144_v21 = vmul.f32 %v527_v19, %v133_v20 }
 0x110   :  { %v146_v22 = vsub.f32 %v125_v8, %v144_v21 }
 0x112   :  { %v148_v23 = vmul.f32 %v146_v22, %v146_v22 }
 0x114   :  { %v150_v24 = vsel %vm111_vm0, %v148_v23, 0.0 }
 0x115   :  { %151 = vadd.xlane.f32.xlu1 %v150_v24  ;;  %v136_v25 = vpop.xlane.xlu0 %135 }
 0x116   :  { %v145_v26 = vmul.f32 %v527_v19, %v136_v25 }
 0x118   :  { %v147_v27 = vsub.f32 %v127_v11, %v145_v26 }
 0x11a   :  { %v149_v28 = vmul.f32 %v147_v27, %v147_v27 }
 0x11c   :  { %v153_v29 = vsel %vm111_vm0, %v149_v28, 0.0 }
 0x11d   :  { %154 = vadd.xlane.f32.xlu1 %v153_v29 }
 0x188   :  { %v152_v31 = vpop.xlane.xlu1 %151 }
 0x189   :  { %v156_v32 = vmul.f32 %v152_v31, %v527_v19  ;;  %v351_v31 = vld [vmem:[%s577_s7] ss:$0 sm:$0xff] }
 0x18b   :  { %v158_v34 = vadd.f32 1e-05, %v156_v32 }
 0x18d   :  { %357 = vrsqrt.f32 %v158_v34  ;;  %vm166_vm3 = vweird.f32 %v158_v34 }
 0x190   :  { %v155_v35 = vpop.xlane.xlu1 %154 }
 0x191   :  { %v157_v36 = vmul.f32 %v155_v35, %v527_v19 }
 0x193   :  { %v358_v37 = vpop.eup %357  ;;  %v159_v38 = vadd.f32 1e-05, %v157_v36 }
 0x194   :  { %v161_v39 = vmul.f32 %v358_v37, %v158_v34  ;;  %vm167_vm2 = vweird.f32 %v358_v37  ;;  %v352_v34 = vld [vmem:[%s578_s8] ss:$0 sm:$0xff] }
 0x195   :  { %359 = vrsqrt.f32 %v159_v38  ;;  %vm168_vm4 = vmor %vm166_vm3, %vm167_vm2  ;;  %vm176_vm6 = vweird.f32 %v159_v38 }
 0x196   :  { %v162_v40 = vmul.f32 %v358_v37, %v161_v39  ;;  %v353_v39 = vld [vmem:[%s579_s9] ss:$0 sm:$0xff] }
 0x198   :  { %v163_v41 = vmul.f32 0.5, %v162_v40 }
 0x19a   :  { %v164_v42 = vsub.f32 1.5, %v163_v41 }
 0x19b   :  { %v360_v43 = vpop.eup %359 }
 0x19c   :  { %v165_v44 = vmul.f32 %v358_v37, %v164_v42  ;;  %v171_v45 = vmul.f32 %v360_v43, %v159_v38  ;;  %vm177_vm5 = vweird.f32 %v360_v43 }
 0x19d   :  { %vm178_vm7 = vmor %vm176_vm6, %vm177_vm5 }
 0x19e   :  { %v169_v46 = vsel %vm168_vm4, %v358_v37, %v165_v44  ;;  %v172_v47 = vmul.f32 %v360_v43, %v171_v45 }
 0x19f   :  { %v180_v49 = vmul.f32 %v169_v46, %v146_v22 }
 0x1a0   :  { %v173_v48 = vmul.f32 0.5, %v172_v47 }
 0x1a1   :  { %v185_v53 = vmul.f32 %v348_v50, %v180_v49 }
 0x1a2   :  { %v174_v51 = vsub.f32 1.5, %v173_v48 }
 0x1a3   :  { %v190_v58 = vadd.f32 %v349_v54, %v185_v53 }
 0x1a4   :  { %v175_v52 = vmul.f32 %v360_v43, %v174_v51  ;;  %v354_v51 = vld [vmem:[#allocation2] ss:$0 sm:$0xff] }
 0x1a5   :  { %v192_v60 = vmax.f32 %v190_v58, 0.0 }
 0x1a6   :  { %v179_v55 = vsel %vm178_vm7, %v360_v43, %v175_v52 }
 0x1a7   :  { %v181_v56 = vmul.f32 %v179_v55, %v147_v27 }
 0x1a9   :  { %v186_v57 = vmul.f32 %v348_v50, %v181_v56 }
 0x1ab   :  { %v191_v59 = vadd.f32 %v349_v54, %v186_v57 }
 0x1ad   :  { %v193_v61 = vmax.f32 %v191_v59, 0.0 }
 0x1af   :  { %v194_v62 = vpack.c.bf16 %v193_v61, %v192_v60 }
 0x1b1   :  { %334 = vmatmul.msk.bf16.vlgmr.msra.gmra.mxu1 %vm111_vm0, %v194_v62 }
 0x22e   :  { %v227_v0 = vpop.f32.mrf.mxu1 }
 0x22f   :  { %v228_v1 = vadd.f32 %v350_v63, %v227_v0 }
 0x231   :  { %v234_v2 = vsel %vm111_vm0, %v228_v1, 0.0 }
 0x232   :  { %235 = vadd.xlane.f32.xlu2 %v234_v2 }
 0x236   :  { %v229_v3 = vpop.f32.mrf.mxu1 }
 0x237   :  { %v230_v4 = vadd.f32 %v350_v63, %v229_v3 }
 0x239   :  { %v237_v5 = vsel %vm111_vm0, %v230_v4, 0.0 }
 0x23a   :  { %238 = vadd.xlane.f32.xlu2 %v237_v5 }
 0x2a5   :  { %v236_v6 = vpop.xlane.xlu2 %235 }
 0x2a6   :  { %v240_v7 = vmul.f32 %v236_v6, %v527_v19 }
 0x2a8   :  { %v242_v8 = vsub.f32 %v228_v1, %v240_v7 }
 0x2aa   :  { %v244_v9 = vmul.f32 %v242_v8, %v242_v8 }
 0x2ac   :  { %v246_v10 = vsel %vm111_vm0, %v244_v9, 0.0 }
 0x2ad   :  { %247 = vadd.xlane.f32.xlu0 %v246_v10  ;;  %v239_v11 = vpop.xlane.xlu2 %238 }
 0x2ae   :  { %v241_v12 = vmul.f32 %v239_v11, %v527_v19 }
 0x2b0   :  { %v243_v13 = vsub.f32 %v230_v4, %v241_v12 }
 0x2b2   :  { %v245_v14 = vmul.f32 %v243_v13, %v243_v13 }
 0x2b4   :  { %v249_v15 = vsel %vm111_vm0, %v245_v14, 0.0 }
 0x2b5   :  { %250 = vadd.xlane.f32.xlu1 %v249_v15 }
 0x320   :  { %v248_v16 = vpop.xlane.xlu0 %247 }
 0x321   :  { %v252_v17 = vmul.f32 %v248_v16, %v527_v19 }
 0x323   :  { %v254_v18 = vadd.f32 1e-05, %v252_v17 }
 0x325   :  { %361 = vrsqrt.f32 %v254_v18  ;;  %vm262_vm9 = vweird.f32 %v254_v18 }
 0x328   :  { %v251_v20 = vpop.xlane.xlu1 %250 }
 0x329   :  { %v253_v21 = vmul.f32 %v251_v20, %v527_v19 }
 0x32b   :  { %v362_v22 = vpop.eup %361  ;;  %v255_v23 = vadd.f32 1e-05, %v253_v21 }
 0x32c   :  { %v257_v24 = vmul.f32 %v362_v22, %v254_v18  ;;  %vm263_vm8 = vweird.f32 %v362_v22 }
 0x32d   :  { %363 = vrsqrt.f32 %v255_v23  ;;  %vm264_vm10 = vmor %vm262_vm9, %vm263_vm8  ;;  %vm272_vm12 = vweird.f32 %v255_v23 }
 0x32e   :  { %v258_v25 = vmul.f32 %v362_v22, %v257_v24 }
 0x330   :  { %v259_v26 = vmul.f32 0.5, %v258_v25 }
 0x332   :  { %v260_v27 = vsub.f32 1.5, %v259_v26 }
 0x333   :  { %v364_v28 = vpop.eup %363 }
 0x334   :  { %v261_v29 = vmul.f32 %v362_v22, %v260_v27  ;;  %v267_v30 = vmul.f32 %v364_v28, %v255_v23  ;;  %vm273_vm11 = vweird.f32 %v364_v28 }
 0x335   :  { %vm274_vm13 = vmor %vm272_vm12, %vm273_vm11 }
 0x336   :  { %v265_v32 = vsel %vm264_vm10, %v362_v22, %v261_v29  ;;  %v268_v33 = vmul.f32 %v364_v28, %v267_v30 }
 0x337   :  { %v276_v19 = vmul.f32 %v265_v32, %v242_v8 }
 0x338   :  { %v269_v35 = vmul.f32 0.5, %v268_v33 }
 0x339   :  { %v281_v36 = vmul.f32 %v351_v31, %v276_v19 }
 0x33a   :  { %v270_v37 = vsub.f32 1.5, %v269_v35 }
 0x33b   :  { %v286_v38 = vadd.f32 %v352_v34, %v281_v36 }
 0x33c   :  { %v271_v40 = vmul.f32 %v364_v28, %v270_v37 }
 0x33d   :  { %v288_v41 = vmax.f32 %v286_v38, 0.0 }
 0x33e   :  { %v275_v42 = vsel %vm274_vm13, %v364_v28, %v271_v40 }
 0x33f   :  { %v294_v43 = vmul.f32 %v353_v39, %v288_v41  ;;  %v277_v44 = vmul.f32 %v275_v42, %v243_v13 }
 0x341   :  { %v296_v45 = vsel %vm111_vm0, %v294_v43, 0.0  ;;  %v282_v46 = vmul.f32 %v351_v31, %v277_v44 }
 0x342   :  { %297 = vadd.xlane.f32.xlu2 %v296_v45 }
 0x343   :  { %v287_v47 = vadd.f32 %v352_v34, %v282_v46 }
 0x345   :  { %v289_v48 = vmax.f32 %v287_v47, 0.0 }
 0x347   :  { %v295_v49 = vmul.f32 %v353_v39, %v289_v48 }
 0x349   :  { %v299_v50 = vsel %vm111_vm0, %v295_v49, 0.0 }
 0x34a   :  { %300 = vadd.xlane.f32.xlu0 %v299_v50 }
 0x3b5   :  { %v298_v52 = vpop.xlane.xlu2 %297 }
 0x3b6   :  { %v306_v53 = vadd.f32 %v354_v51, %v298_v52 }
 0x3b8   :  { %309 = vst.msk [vmem:[%s581_s11] sm:$0xff] %vm308_vm14, %v306_v53 }
 0x3bd   :  { %v301_v54 = vpop.xlane.xlu0 %300 }
 0x3be   :  { %v307_v55 = vadd.f32 %v354_v51, %v301_v54 }
 0x3c0   :  { %310 = vst.msk [vmem:[%s581_s11 + $0x8] sm:$0xff] %vm308_vm14, %v307_v55 }
 0x3c1   :  { %315 = vsyncpa [#allocation4], 1 }
 0x3c2   :  { %316 = vsyncpa [#allocation6], 1 }

</bundles_post_ra>
